<compile_context>
chip_gen: v7x
topology: tpu7x:2x2x1
jax: 0.10.0
libtpu: 0.0.40
codegen_flags: <defaults>
</compile_context>

<pallas_src>
import numpy as np
import jax
import jax.numpy as jnp
from jax import lax
from jax.experimental import pallas as pl
from jax.experimental.pallas import tpu as pltpu


def fire_pallas(x_nchw, wsq, bsq, we1, be1, wdw_hwc, we3):
    N, Cin, H, W = x_nchw.shape
    Csq = wsq.shape[1]
    Ce1 = we1.shape[1]
    Ce3 = we3.shape[1]
    HW = H * W

    def kernel(x_ref, wsq_ref, bsq_ref, we1_ref, be1_ref, wdw_ref, we3_ref, o_ref):
        x = x_ref[0]                                            # (Cin, HW)

        # ---- squeeze 1x1 + bias + ReLU (channel-major GEMM) ----
        s = jnp.dot(wsq_ref[...], x, preferred_element_type=jnp.float32)
        s = jnp.maximum(s + bsq_ref[...], 0.0)                  # (Csq, HW)

        # ---- expand1x1 1x1 + bias + ReLU -> lane-dense (Ce1, HW) slab ----
        e1 = jnp.dot(we1_ref[...], s, preferred_element_type=jnp.float32)
        e1 = jnp.maximum(e1 + be1_ref[...], 0.0)
        o_ref[0, 0:Ce1, :] = e1.astype(o_ref.dtype)

        # ---- depthwise 3x3 (pad=1) + ReLU ----
        # 9 lane-shifted FMAs along the flattened spatial axis; boundary
        # handling lives in wdw_ref (taps pre-multiplied by the 0/1
        # zero-padding validity mask), so shifted garbage contributes 0.
        zpad = jnp.zeros((Csq, W + 1), jnp.float32)
        s_pad = jnp.concatenate([zpad, s, zpad], axis=1)        # (Csq, HW + 2W + 2)
        d = jnp.zeros((Csq, HW), jnp.float32)
        for kh in range(3):
            for kw in range(3):
                off = (W + 1) + (kh - 1) * W + (kw - 1)
                d = d + s_pad[:, off:off + HW] * wdw_ref[kh * 3 + kw]
        d = jnp.maximum(d, 0.0)                                 # ReLU after depthwise

        # ---- pointwise 1x1 (no bias) ----
        # No trailing ReLU: the duplicate OrderedDict key in Block_ drops it.
        e3 = jnp.dot(we3_ref[...], d, preferred_element_type=jnp.float32)
        o_ref[0, Ce1:Ce1 + Ce3, :] = e3.astype(o_ref.dtype)

    # --- wrapper-side prep: pure reshapes + tiny weight transposes only ---
    x_flat = x_nchw.reshape(N, Cin, HW).astype(jnp.float32)
    wsq_t = jnp.transpose(wsq).astype(jnp.float32)              # (Csq, Cin)
    we1_t = jnp.transpose(we1).astype(jnp.float32)              # (Ce1, Csq)
    we3_t = jnp.transpose(we3).astype(jnp.float32)              # (Ce3, Csq)
    bsq_c = bsq.reshape(Csq, 1).astype(jnp.float32)
    be1_c = be1.reshape(Ce1, 1).astype(jnp.float32)

    # 3x3 depthwise taps, pre-broadcast over H*W and pre-masked for zero padding
    # (hoists all broadcast/mask work out of the kernel's unrolled tap loop).
    valid = np.zeros((9, HW), np.float32)
    for kh in range(3):
        for kw in range(3):
            hs = np.arange(H) + (kh - 1)
            ws = np.arange(W) + (kw - 1)
            m = (((hs >= 0) & (hs < H)).astype(np.float32)[:, None]
                 * ((ws >= 0) & (ws < W)).astype(np.float32)[None, :])
            valid[kh * 3 + kw] = m.reshape(-1)
    wdw9 = wdw_hwc.reshape(9, Csq).astype(jnp.float32)          # (9, Csq)
    wdw_full = wdw9[:, :, None] * jnp.asarray(valid)[:, None, :]  # (9, Csq, HW)

    out = pl.pallas_call(
        kernel,
        out_shape=jax.ShapeDtypeStruct((N, Ce1 + Ce3, HW), jnp.float32),
        grid_spec=pltpu.PrefetchScalarGridSpec(
            num_scalar_prefetch=0,
            grid=(N,),
            in_specs=[
                pl.BlockSpec((1, Cin, HW), lambda n: (n, 0, 0)),
                pl.BlockSpec((Csq, Cin), lambda n: (0, 0)),
                pl.BlockSpec((Csq, 1), lambda n: (0, 0)),
                pl.BlockSpec((Ce1, Csq), lambda n: (0, 0)),
                pl.BlockSpec((Ce1, 1), lambda n: (0, 0)),
                pl.BlockSpec((9, Csq, HW), lambda n: (0, 0, 0)),
                pl.BlockSpec((Ce3, Csq), lambda n: (0, 0)),
            ],
            out_specs=pl.BlockSpec((1, Ce1 + Ce3, HW), lambda n: (n, 0, 0)),
        ),
        compiler_params=pltpu.CompilerParams(dimension_semantics=("parallel",)),
    )(x_flat, wsq_t, bsq_c, we1_t, be1_c, wdw_full, we3_t)

    # Pure reshape back to NCHW — no transpose / concat passes over HBM.
    return out.reshape(N, Ce1 + Ce3, H, W)


def fire_reference(x, wsq, bsq, we1, be1, wdw_hwc, we3):
    """Pure-JAX reference matching the PyTorch module (NCHW convs)."""
    dn = ('NCHW', 'OIHW', 'NCHW')

    def conv1x1(inp, w_ck):   # w_ck: (Cin, Cout)
        w = jnp.transpose(w_ck, (1, 0))[:, :, None, None]
        return lax.conv_general_dilated(inp, w, (1, 1), 'VALID', dimension_numbers=dn)

    s = jax.nn.relu(conv1x1(x, wsq) + bsq[None, :, None, None])
    e1 = jax.nn.relu(conv1x1(s, we1) + be1[None, :, None, None])

    wd = jnp.transpose(wdw_hwc, (2, 0, 1))[:, None, :, :]   # (Csq,1,3,3)
    d = lax.conv_general_dilated(s, wd, (1, 1), ((1, 1), (1, 1)),
                                 dimension_numbers=dn,
                                 feature_group_count=s.shape[1])
    d = jax.nn.relu(d)
    e3 = conv1x1(d, we3)          # no trailing ReLU (dropped by duplicate dict key)
    return jnp.concatenate([e1, e3], axis=1)


if __name__ == "__main__":
    # Fire_(inplanes=4, squeeze_planes=8, expand1x1_planes=16, expand3x3_planes=16)
    N, Cin, H, W = 2, 4, 16, 16
    Csq, Ce1, Ce3 = 8, 16, 16

    key = jax.random.PRNGKey(0)
    k = jax.random.split(key, 7)
    x = jax.random.normal(k[0], (N, Cin, H, W), jnp.float32)
    wsq = jax.random.normal(k[1], (Cin, Csq), jnp.float32) * 0.2
    bsq = jax.random.normal(k[2], (Csq,), jnp.float32) * 0.1
    we1 = jax.random.normal(k[3], (Csq, Ce1), jnp.float32) * 0.2
    be1 = jax.random.normal(k[4], (Ce1,), jnp.float32) * 0.1
    wdw = jax.random.normal(k[5], (3, 3, Csq), jnp.float32) * 0.2
    we3 = jax.random.normal(k[6], (Csq, Ce3), jnp.float32) * 0.2

    out = jax.block_until_ready(fire_pallas(x, wsq, bsq, we1, be1, wdw, we3))
    ref = jax.block_until_ready(fire_reference(x, wsq, bsq, we1, be1, wdw, we3))

    assert out.shape == (N, Ce1 + Ce3, H, W), out.shape
    assert jnp.allclose(out, ref, atol=1e-4, rtol=1e-4), \
        f"max abs err {jnp.max(jnp.abs(out - ref))}"
    print("KERNEL_OK")
</pallas_src>

<mosaic_0001>
module attributes {stable_mosaic.version = 11 : i64} {
  func.func @kernel(%arg0: i32, %arg1: memref<1x4x256xf32, #tpu.memory_space<vmem>>, %arg2: memref<8x4xf32, #tpu.memory_space<vmem>>, %arg3: memref<8x1xf32, #tpu.memory_space<vmem>>, %arg4: memref<16x8xf32, #tpu.memory_space<vmem>>, %arg5: memref<16x1xf32, #tpu.memory_space<vmem>>, %arg6: memref<9x8x256xf32, #tpu.memory_space<vmem>>, %arg7: memref<16x8xf32, #tpu.memory_space<vmem>>, %arg8: memref<1x32x256xf32, #tpu.memory_space<vmem>>) attributes {dimension_semantics = [#tpu.dimension_semantics<parallel>], iteration_bounds = array<i64: 2>, scalar_prefetch = 0 : i64, scratch_operands = 0 : i64, tpu.core_type = #tpu.core_type<tc>, window_params = [{transform_indices = @transform_0, window_bounds = array<i64: 1, 4, 256>}, {pipeline_mode = #tpu.pipeline_mode<synchronous>, transform_indices = @transform_1, window_bounds = array<i64: 8, 4>}, {pipeline_mode = #tpu.pipeline_mode<synchronous>, transform_indices = @transform_2, window_bounds = array<i64: 8, 1>}, {pipeline_mode = #tpu.pipeline_mode<synchronous>, transform_indices = @transform_3, window_bounds = array<i64: 16, 8>}, {pipeline_mode = #tpu.pipeline_mode<synchronous>, transform_indices = @transform_4, window_bounds = array<i64: 16, 1>}, {pipeline_mode = #tpu.pipeline_mode<synchronous>, transform_indices = @transform_5, window_bounds = array<i64: 9, 8, 256>}, {pipeline_mode = #tpu.pipeline_mode<synchronous>, transform_indices = @transform_6, window_bounds = array<i64: 16, 8>}, {transform_indices = @transform_7, window_bounds = array<i64: 1, 32, 256>}]} {
    %c0 = arith.constant 0 : index
    %c0_0 = arith.constant 0 : index
    %c0_1 = arith.constant 0 : index
    %0 = vector.load %arg1[%c0, %c0_0, %c0_1] : memref<1x4x256xf32, #tpu.memory_space<vmem>>, vector<1x4x256xf32>
    %1 = vector.shape_cast %0 : vector<1x4x256xf32> to vector<4x256xf32>
    %c0_2 = arith.constant 0 : index
    %c0_3 = arith.constant 0 : index
    %2 = vector.load %arg2[%c0_2, %c0_3] : memref<8x4xf32, #tpu.memory_space<vmem>>, vector<8x4xf32>
    %cst = arith.constant dense<0.000000e+00> : vector<8x256xf32>
    %3 = tpu.matmul %2, %1, %cst {dimension_numbers = #tpu.dot_dimension_numbers<[1], [0], [0], [1], [0, 0, 1, 1], [], []>} : vector<8x4xf32>, vector<4x256xf32>, vector<8x256xf32> -> vector<8x256xf32>
    %c0_4 = arith.constant 0 : index
    %c0_5 = arith.constant 0 : index
    %4 = vector.load %arg3[%c0_4, %c0_5] : memref<8x1xf32, #tpu.memory_space<vmem>>, vector<8x1xf32>
    %5 = vector.broadcast %4 : vector<8x1xf32> to vector<8x256xf32>
    %6 = arith.addf %3, %5 : vector<8x256xf32>
    %cst_6 = arith.constant 0.000000e+00 : f32
    %7 = vector.broadcast %cst_6 : f32 to vector<8x256xf32>
    %8 = arith.maximumf %6, %7 : vector<8x256xf32>
    %c0_7 = arith.constant 0 : index
    %c0_8 = arith.constant 0 : index
    %9 = vector.load %arg4[%c0_7, %c0_8] : memref<16x8xf32, #tpu.memory_space<vmem>>, vector<16x8xf32>
    %cst_9 = arith.constant dense<0.000000e+00> : vector<16x256xf32>
    %10 = tpu.matmul %9, %8, %cst_9 {dimension_numbers = #tpu.dot_dimension_numbers<[1], [0], [0], [1], [0, 0, 1, 1], [], []>} : vector<16x8xf32>, vector<8x256xf32>, vector<16x256xf32> -> vector<16x256xf32>
    %c0_10 = arith.constant 0 : index
    %c0_11 = arith.constant 0 : index
    %11 = vector.load %arg5[%c0_10, %c0_11] : memref<16x1xf32, #tpu.memory_space<vmem>>, vector<16x1xf32>
    %12 = vector.broadcast %11 : vector<16x1xf32> to vector<16x256xf32>
    %13 = arith.addf %10, %12 : vector<16x256xf32>
    %cst_12 = arith.constant 0.000000e+00 : f32
    %14 = vector.broadcast %cst_12 : f32 to vector<16x256xf32>
    %15 = arith.maximumf %13, %14 : vector<16x256xf32>
    %c0_13 = arith.constant 0 : index
    %c0_14 = arith.constant 0 : index
    %c0_15 = arith.constant 0 : index
    %16 = vector.load %arg8[%c0_13, %c0_14, %c0_15] : memref<1x32x256xf32, #tpu.memory_space<vmem>>, vector<1x16x256xf32>
    %17 = vector.shape_cast %16 : vector<1x16x256xf32> to vector<16x256xf32>
    %18 = vector.shape_cast %15 : vector<16x256xf32> to vector<1x16x256xf32>
    tpu.vector_store %arg8[%c0_13, %c0_14, %c0_15], %18 {strides = array<i32>} : memref<1x32x256xf32, #tpu.memory_space<vmem>>, vector<1x16x256xf32>,
    %cst_16 = arith.constant 0.000000e+00 : f32
    %19 = vector.broadcast %cst_16 : f32 to vector<8x17xf32>
    %20 = tpu.concatenate %19, %8, %19 in 1 : vector<8x17xf32>, vector<8x256xf32>, vector<8x17xf32> -> vector<8x290xf32>
    %cst_17 = arith.constant 0.000000e+00 : f32
    %21 = vector.broadcast %cst_17 : f32 to vector<8x256xf32>
    %22 = vector.extract_strided_slice %20 {offsets = [0, 0], sizes = [8, 256], strides = [1, 1]} : vector<8x290xf32> to vector<8x256xf32>
    %c0_18 = arith.constant 0 : index
    %c0_19 = arith.constant 0 : index
    %c0_20 = arith.constant 0 : index
    %23 = vector.load %arg6[%c0_18, %c0_19, %c0_20] : memref<9x8x256xf32, #tpu.memory_space<vmem>>, vector<1x8x256xf32>
    %24 = vector.shape_cast %23 : vector<1x8x256xf32> to vector<8x256xf32>
    %25 = arith.mulf %22, %24 : vector<8x256xf32>
    %26 = arith.addf %21, %25 : vector<8x256xf32>
    %27 = vector.extract_strided_slice %20 {offsets = [0, 1], sizes = [8, 256], strides = [1, 1]} : vector<8x290xf32> to vector<8x256xf32>
    %c1 = arith.constant 1 : index
    %c0_21 = arith.constant 0 : index
    %c0_22 = arith.constant 0 : index
    %28 = vector.load %arg6[%c1, %c0_21, %c0_22] : memref<9x8x256xf32, #tpu.memory_space<vmem>>, vector<1x8x256xf32>
    %29 = vector.shape_cast %28 : vector<1x8x256xf32> to vector<8x256xf32>
    %30 = arith.mulf %27, %29 : vector<8x256xf32>
    %31 = arith.addf %26, %30 : vector<8x256xf32>
    %32 = vector.extract_strided_slice %20 {offsets = [0, 2], sizes = [8, 256], strides = [1, 1]} : vector<8x290xf32> to vector<8x256xf32>
    %c2 = arith.constant 2 : index
    %c0_23 = arith.constant 0 : index
    %c0_24 = arith.constant 0 : index
    %33 = vector.load %arg6[%c2, %c0_23, %c0_24] : memref<9x8x256xf32, #tpu.memory_space<vmem>>, vector<1x8x256xf32>
    %34 = vector.shape_cast %33 : vector<1x8x256xf32> to vector<8x256xf32>
    %35 = arith.mulf %32, %34 : vector<8x256xf32>
    %36 = arith.addf %31, %35 : vector<8x256xf32>
    %37 = vector.extract_strided_slice %20 {offsets = [0, 16], sizes = [8, 256], strides = [1, 1]} : vector<8x290xf32> to vector<8x256xf32>
    %c3 = arith.constant 3 : index
    %c0_25 = arith.constant 0 : index
    %c0_26 = arith.constant 0 : index
    %38 = vector.load %arg6[%c3, %c0_25, %c0_26] : memref<9x8x256xf32, #tpu.memory_space<vmem>>, vector<1x8x256xf32>
    %39 = vector.shape_cast %38 : vector<1x8x256xf32> to vector<8x256xf32>
    %40 = arith.mulf %37, %39 : vector<8x256xf32>
    %41 = arith.addf %36, %40 : vector<8x256xf32>
    %42 = vector.extract_strided_slice %20 {offsets = [0, 17], sizes = [8, 256], strides = [1, 1]} : vector<8x290xf32> to vector<8x256xf32>
    %c4 = arith.constant 4 : index
    %c0_27 = arith.constant 0 : index
    %c0_28 = arith.constant 0 : index
    %43 = vector.load %arg6[%c4, %c0_27, %c0_28] : memref<9x8x256xf32, #tpu.memory_space<vmem>>, vector<1x8x256xf32>
    %44 = vector.shape_cast %43 : vector<1x8x256xf32> to vector<8x256xf32>
    %45 = arith.mulf %42, %44 : vector<8x256xf32>
    %46 = arith.addf %41, %45 : vector<8x256xf32>
    %47 = vector.extract_strided_slice %20 {offsets = [0, 18], sizes = [8, 256], strides = [1, 1]} : vector<8x290xf32> to vector<8x256xf32>
    %c5 = arith.constant 5 : index
    %c0_29 = arith.constant 0 : index
    %c0_30 = arith.constant 0 : index
    %48 = vector.load %arg6[%c5, %c0_29, %c0_30] : memref<9x8x256xf32, #tpu.memory_space<vmem>>, vector<1x8x256xf32>
    %49 = vector.shape_cast %48 : vector<1x8x256xf32> to vector<8x256xf32>
    %50 = arith.mulf %47, %49 : vector<8x256xf32>
    %51 = arith.addf %46, %50 : vector<8x256xf32>
    %52 = vector.extract_strided_slice %20 {offsets = [0, 32], sizes = [8, 256], strides = [1, 1]} : vector<8x290xf32> to vector<8x256xf32>
    %c6 = arith.constant 6 : index
    %c0_31 = arith.constant 0 : index
    %c0_32 = arith.constant 0 : index
    %53 = vector.load %arg6[%c6, %c0_31, %c0_32] : memref<9x8x256xf32, #tpu.memory_space<vmem>>, vector<1x8x256xf32>
    %54 = vector.shape_cast %53 : vector<1x8x256xf32> to vector<8x256xf32>
    %55 = arith.mulf %52, %54 : vector<8x256xf32>
    %56 = arith.addf %51, %55 : vector<8x256xf32>
    %57 = vector.extract_strided_slice %20 {offsets = [0, 33], sizes = [8, 256], strides = [1, 1]} : vector<8x290xf32> to vector<8x256xf32>
    %c7 = arith.constant 7 : index
    %c0_33 = arith.constant 0 : index
    %c0_34 = arith.constant 0 : index
    %58 = vector.load %arg6[%c7, %c0_33, %c0_34] : memref<9x8x256xf32, #tpu.memory_space<vmem>>, vector<1x8x256xf32>
    %59 = vector.shape_cast %58 : vector<1x8x256xf32> to vector<8x256xf32>
    %60 = arith.mulf %57, %59 : vector<8x256xf32>
    %61 = arith.addf %56, %60 : vector<8x256xf32>
    %62 = vector.extract_strided_slice %20 {offsets = [0, 34], sizes = [8, 256], strides = [1, 1]} : vector<8x290xf32> to vector<8x256xf32>
    %c8 = arith.constant 8 : index
    %c0_35 = arith.constant 0 : index
    %c0_36 = arith.constant 0 : index
    %63 = vector.load %arg6[%c8, %c0_35, %c0_36] : memref<9x8x256xf32, #tpu.memory_space<vmem>>, vector<1x8x256xf32>
    %64 = vector.shape_cast %63 : vector<1x8x256xf32> to vector<8x256xf32>
    %65 = arith.mulf %62, %64 : vector<8x256xf32>
    %66 = arith.addf %61, %65 : vector<8x256xf32>
    %cst_37 = arith.constant 0.000000e+00 : f32
    %67 = vector.broadcast %cst_37 : f32 to vector<8x256xf32>
    %68 = arith.maximumf %66, %67 : vector<8x256xf32>
    %c0_38 = arith.constant 0 : index
    %c0_39 = arith.constant 0 : index
    %69 = vector.load %arg7[%c0_38, %c0_39] : memref<16x8xf32, #tpu.memory_space<vmem>>, vector<16x8xf32>
    %cst_40 = arith.constant dense<0.000000e+00> : vector<16x256xf32>
    %70 = tpu.matmul %69, %68, %cst_40 {dimension_numbers = #tpu.dot_dimension_numbers<[1], [0], [0], [1], [0, 0, 1, 1], [], []>} : vector<16x8xf32>, vector<8x256xf32>, vector<16x256xf32> -> vector<16x256xf32>
    %c0_41 = arith.constant 0 : index
    %c16 = arith.constant 16 : index
    %c0_42 = arith.constant 0 : index
    %71 = vector.load %arg8[%c0_41, %c16, %c0_42] : memref<1x32x256xf32, #tpu.memory_space<vmem>>, vector<1x16x256xf32>
    %72 = vector.shape_cast %71 : vector<1x16x256xf32> to vector<16x256xf32>
    %73 = vector.shape_cast %70 : vector<16x256xf32> to vector<1x16x256xf32>
    tpu.vector_store %arg8[%c0_41, %c16, %c0_42], %73 {strides = array<i32>} : memref<1x32x256xf32, #tpu.memory_space<vmem>>, vector<1x16x256xf32>,
    return
  }
  func.func @transform_0(%arg0: i32) -> (i32, i32, i32) {
    %c0_i32 = arith.constant 0 : i32
    %c0_i32_0 = arith.constant 0 : i32
    %c0_i32_1 = arith.constant 0 : i32
    return %arg0, %c0_i32, %c0_i32_0 : i32, i32, i32
  }
  func.func @transform_1(%arg0: i32) -> (i32, i32) {
    %c0_i32 = arith.constant 0 : i32
    %c0_i32_0 = arith.constant 0 : i32
    %c0_i32_1 = arith.constant 0 : i32
    return %c0_i32, %c0_i32_0 : i32, i32
  }
  func.func @transform_2(%arg0: i32) -> (i32, i32) {
    %c0_i32 = arith.constant 0 : i32
    %c0_i32_0 = arith.constant 0 : i32
    %c0_i32_1 = arith.constant 0 : i32
    return %c0_i32, %c0_i32_0 : i32, i32
  }
  func.func @transform_3(%arg0: i32) -> (i32, i32) {
    %c0_i32 = arith.constant 0 : i32
    %c0_i32_0 = arith.constant 0 : i32
    %c0_i32_1 = arith.constant 0 : i32
    return %c0_i32, %c0_i32_0 : i32, i32
  }
  func.func @transform_4(%arg0: i32) -> (i32, i32) {
    %c0_i32 = arith.constant 0 : i32
    %c0_i32_0 = arith.constant 0 : i32
    %c0_i32_1 = arith.constant 0 : i32
    return %c0_i32, %c0_i32_0 : i32, i32
  }
  func.func @transform_5(%arg0: i32) -> (i32, i32, i32) {
    %c0_i32 = arith.constant 0 : i32
    %c0_i32_0 = arith.constant 0 : i32
    %c0_i32_1 = arith.constant 0 : i32
    %c0_i32_2 = arith.constant 0 : i32
    return %c0_i32, %c0_i32_0, %c0_i32_1 : i32, i32, i32
  }
  func.func @transform_6(%arg0: i32) -> (i32, i32) {
    %c0_i32 = arith.constant 0 : i32
    %c0_i32_0 = arith.constant 0 : i32
    %c0_i32_1 = arith.constant 0 : i32
    return %c0_i32, %c0_i32_0 : i32, i32
  }
  func.func @transform_7(%arg0: i32) -> (i32, i32, i32) {
    %c0_i32 = arith.constant 0 : i32
    %c0_i32_0 = arith.constant 0 : i32
    %c0_i32_1 = arith.constant 0 : i32
    return %arg0, %c0_i32, %c0_i32_0 : i32, i32, i32
  }
}

</mosaic_0001>

<bundles_post_ra>
// kernel: tpu_custom_call.1
= control target key start
LH: loop header
LB: loop body
LE: loop exit
PB: predicated region body
PF: predicated region fallthrough
CT: control target
= control target key end

     0   :  { %12 = vsyncpa [#allocation3], 0  ;;  %s1442_s0 = inlined_call_operand.vmem [shape: f32[2,4,256], index: 0, kind: input, shape index: {}]   ;;  %s1443_s1 = inlined_call_operand.vmem [shape: f32[8,4], index: 1, kind: input, shape index: {}]   ;;  %s1444_s2 = inlined_call_operand.vmem [shape: f32[8,1], index: 2, kind: input, shape index: {}]   ;;  %s1445_s3 = inlined_call_operand.vmem [shape: f32[16,8], index: 3, kind: input, shape index: {}]   ;;  %s1446_s4 = inlined_call_operand.vmem [shape: f32[16,1], index: 4, kind: input, shape index: {}]   ;;  %s1447_s5 = inlined_call_operand.hbm [shape: f32[9,8,256], index: 5, kind: input, shape index: {}]   ;;  %s1448_s6 = inlined_call_operand.vmem [shape: f32[16,8], index: 6, kind: input, shape index: {}]   ;;  %s1449_s7 = inlined_call_operand.hbm [shape: f32[2,32,256], index: 7, kind: output, shape index: {}]  }
   0x1   :  { %13 = vsyncpa [#allocation4], 0 }
   0x2   :  { %15 = vsyncpa [#allocation4 + $0x1], 0  ;;  %s1207_s24 = smov 0   ;;  %s1209_s25 = smov 0  }
   0x3   :  { %s1211_s26 = smov 0   ;;  %s1213_s27 = smov 0  }
   0x4 LB: > { %s1228_s28 = sadd.s32 4294967295, %s1142_s27   ;;  %s951_s29 = sadd.s32 4294967294, %s1142_s27   ;;  %s1142_s27 = sphi %s1213_s27, %s1465_s27   ;;  %s1138_s26 = sphi %s1211_s26, %s1464_s26   ;;  %s1134_s25 = sphi %s1209_s25, %s1463_s25   ;;  %s1130_s24 = sphi %s1207_s24, %s1462_s24  }
   0x5   : > { %s1232_s30 = sadd.s32 1, %s1142_s27   ;;  %s180_s8 = sadd.s32 1, %s1138_s26 }
   0x6   : > { %s177_s9 = ssub.s32 %s1142_s27, %s1232_s30  ;;  %p190_p0 = scmp.ne.s32.totalorder %s1138_s26, %s1134_s25 }
   0x7   : > { %p178_p1 = scmp.eq.s32.totalorder %s177_s9, 0  ;;  %p191_p2 = scmp.eq.s32.totalorder %s1228_s28, 1 }
   0x8   : > { %p196_p3 = scmp.ne.s32.totalorder %s1134_s25, %s1130_s24  ;;  %p197_p4 = scmp.eq.s32.totalorder %s951_s29, 1 }
   0x9   : > { %s1243_s10 = scalar_select %p178_p1, %s1138_s26, %s180_s8  }
   0xa   : > { %p1245_p5 = por %p191_p2, %p190_p0  ;;  %p1249_p6 = por %p197_p4, %p196_p3 }
   0xb   : > { %p952_p7 = scmp.ge.s32.totalorder %s1142_s27, 1  ;;  %p204_p8 = scmp.lt.s32.totalorder %s1142_s27, 3 }
   0xc   : > { %s1453_s11 = scalar_select %p1245_p5, 1, 0 }
   0xd   : > { %s1454_s12 = scalar_select %p1249_p6, 1, 0 }
   0xe   : > { %p1450_p9 = scmp.eq.s32.totalorder %s1228_s28, 0  ;;  %p1256_p10 = pnand %p952_p7, %p204_p8 }
   0xf   : > { %s1144_s14 = smov [#allocation2]   ;;  %s1048_s19 = scalar_lea.hbm %s1447_s5, 2304 }
  0x10   : > { %s1455_s13 = scalar_select %p1256_p10, 1, 0 }
  0x11   : > { %s228_s15 = sshll.u32 %s1144_s14, 4  ;;  %p980_p11 = pneg %p1256_p10  ;;  %s229_s15 = int_to_ptr.vmem [resolvable:$true] %s228_s15 }
  0x12   : > { %p1049_p13 = scmp.ne.s32.totalorder %s1447_s5, %s1048_s19  ;;  %p1055_p3 = scmp.lt.u32.totalorder %s1048_s19, %s1447_s5 }
  0x13   : > { %p1264_p12 = pnand %p1450_p9, %p980_p11 }
  0x15   : > { %p1050_p0 = pneg %p1264_p12 }
  0x17   : > { %p1051_p1 = pnand %p1050_p0, %p1049_p13 }
  0x19   : > { %p1052_p2 = pneg %p1051_p1 }
  0x1b   : > { %p1057_p4 = pnand %p1055_p3, %p1052_p2 }
  0x1d   : > { %1060 = shalt.err (!%p1057_p4)
}
  0x1e   : > { %s1061_s29 = scalar_lea.vmem %s229_s15, 2304  ;;  %p1069_p9 = scmp.lt.s32.totalorder %s229_s15, %s229_s15 }
  0x1f   : > { %p1062_p7 = scmp.ne.s32.totalorder %s229_s15, %s1061_s29  ;;  %p1070_p6 = scmp.lt.s32.totalorder %s1061_s29, %s1061_s29 }
  0x21   : > { %p1064_p8 = pnand %p1062_p7, %p1050_p0  ;;  %p1071_p5 = por %p1070_p6, %p1069_p9 }
  0x23   : > { %p1065_p11 = pneg %p1064_p8 }
  0x25   : > { %p1072_p10 = pnand %p1071_p5, %p1065_p11 }
  0x27   : > { %1075 = shalt.err (!%p1072_p10)
}
  0x28   : > { %s1145_s8 = smov 256   ;;  %s1146_s9 = smov 16  }
  0x29   : > { %983 = dma.hbm_to_vmem [thread:$0]  (!%p1264_p12), %s1447_s5, 2304, %s229_s15, [#allocation3], %s1145_s8, %s1145_s8, %s1146_s9  }
  0x2a   : > { %p1457_p13 = scmp.ne.s32.totalorder %s1455_s13, 0 }
  0x2b   : > { %p1458_p1 = scmp.eq.s32.totalorder (!%p1457_p13), %s1228_s28, 0 }
  0x2c   : > { %255 = sbr.rel (%p1457_p13) target bundleno = 795 (0x31b), region = 48 }
  0x33   : > { %1121 = dma.done.wait (%p1458_p1), [#allocation3], 2304   ;;  %p1459_p0 = pmov %p1458_p1 }
  0x34   : > { %p287_p5 = scmp.lt.s32.totalorder %s1228_s28, 1  ;;  %v1147_v0 = vmov 0.0   ;;  %v1148_v1 = vmov 0   ;;  %vm306_vm0 = vcmask 1043456   ;;  %v294_v3 = vld [vmem:[%s1444_s2] sm:$0xff]  ;;  %v510_v5 = vld [vmem:[#allocation2 + $0x10] sm:$0xff] }
  0x35   : > { %1123 = vsyncadd (%p1459_p0), [#allocation3], 4294964992  ;;  %375 = vmatprep.mubr.f32.mxu0 %v1147_v0  ;;  %469 = vmatprep.mubr.f32.mxu1 %v1147_v0  ;;  %v293_v6 = vld [vmem:[%s1443_s1] sm:$0xff]  ;;  %vm302_vm1 = vcmask 31744   ;;  %s1149_s29 = smov 1   ;;  %v511_v7 = vld [vmem:[#allocation2 + $0x18] sm:$0xff] }
  0x36   : > { %s288_s16 = scalar_select %p287_p5, %s1228_s28, 1  ;;  %1045 = vset.pattern.permute.xlu0 %v1148_v1  ;;  %1046 = vset.pattern.permute.xlu1 %v1148_v1  ;;  %v543_v8 = vld [vmem:[#allocation2 + $0x20] sm:$0xff]  ;;  %v544_v9 = vld [vmem:[#allocation2 + $0x28] sm:$0xff]  ;;  %v576_v10 = vld [vmem:[#allocation2 + $0x30] sm:$0xff]  ;;  %vm398_vm2 = vcmask 64512   ;;  %vm496_vm3 = vcmask 138240  }
  0x37   : > { %297 = vperm.xlu0 %1045, %v294_v3   ;;  %514 = vrot.lane.b32.xlu1 %v510_v5, %s1149_s29  ;;  %s1150_s8 = smov 2   ;;  %s1151_s9 = smov 16   ;;  %v577_v11 = vld [vmem:[#allocation2 + $0x38] sm:$0xff]  ;;  %v609_v12 = vld [vmem:[#allocation2 + $0x40] sm:$0xff]  ;;  %v610_v13 = vld [vmem:[#allocation2 + $0x48] sm:$0xff]  ;;  %vm518_vm4 = vcmask 7168  }
  0x38   : > { %s972_s13 = sshll.u32 %s288_s16, 3  ;;  %s1152_s14 = smov 17   ;;  %v384_v21 = vld [vmem:[%s1445_s3] sm:$0xff]  ;;  %v642_v22 = vld [vmem:[#allocation2 + $0x58] sm:$0xff]  ;;  %v641_v23 = vld [vmem:[#allocation2 + $0x50] sm:$0xff]  ;;  %vm551_vm5 = vcmask 15360  }
  0x39   : > { %s291_s19 = scalar_lea.vmem %s1442_s0, %s972_s13  ;;  %s1153_s13 = smov 18   ;;  %v385_v24 = vld [vmem:[%s1445_s3 + $0x8] sm:$0xff]  ;;  %v674_v26 = vld [vmem:[#allocation2 + $0x60] sm:$0xff]  ;;  %v708_v27 = vld [vmem:[#allocation2 + $0x78] sm:$0xff]  ;;  %vm584_vm6 = vcmask 130048   ;;  %vm649_vm7 = vcmask 146432  }
  0x3a   : > { %v292_v2 = vld [vmem:[%s291_s19] sm:$0xff]  ;;  %v675_v25 = vld [vmem:[#allocation2 + $0x68] sm:$0xff]  ;;  %s1154_s19 = smov 32   ;;  %v707_v28 = vld [vmem:[#allocation2 + $0x70] sm:$0xff]  ;;  %s1155_s20 = smov 33   ;;  %vm682_vm8 = vcmask 261120  }
  0x3b   : > { %v301_v4 = vcombine.high %v292_v2, %v292_v2  ;;  %516 = vrot.lane.b32.xlu0 %v511_v7, %s1149_s29  ;;  %547 = vrot.lane.b32.xlu1 %v543_v8, %s1150_s8  ;;  %v741_v29 = vld [vmem:[#allocation2 + $0x88] sm:$0xff]  ;;  %v740_v30 = vld [vmem:[#allocation2 + $0x80] sm:$0xff]  ;;  %s1156_s21 = smov 34   ;;  %s1157_s22 = smov 126   ;;  %vm715_vm9 = vcmask 269312   ;;  %vm748_vm10 = vcmask 277504  }
  0x3c   : > { %s1158_s23 = smov 127   ;;  %s1159_s29 = smov 111   ;;  %vm535_vm11 = vcmask 1039360   ;;  %vm568_vm12 = vcmask 1031168   ;;  %vm601_vm13 = vcmask 916480   ;;  %vm633_vm14 = vcmask 908288  }
  0x3d   : > { %960 = vmatprep.subr.msk.mxu0 %vm306_vm0, %v301_v4  ;;  %s1162_s17 = smov 110   ;;  %s1163_s16 = smov 95   ;;  %vm666_vm15 = vcmask 900096  }
  0x3e   : > { %961 = vmatpush1.msk.msra.mxu0 %vm306_vm0, %v292_v2  ;;  %vm699_vm0 = vcmask 785408   ;;  %p1460_p9 = scmp.ne.s32.totalorder %s1453_s11, 0 }
  0x3f   : > { %962 = vmatmul.mubr.msk.f32.vlgmr.msra.gmra.mrb[0].mxu0 %vm302_vm1, %v293_v6  ;;  %549 = vrot.lane.b32.xlu0 %v544_v9, %s1150_s8  ;;  %s1160_s8 = smov 112   ;;  %vm732_vm1 = vcmask 777216  }
  0x40   : > { %846 = vmatprep.mubr.f32.mxu0 %v1147_v0  ;;  %580 = vrot.lane.b32.xlu1 %v576_v10, %s1151_s9 }
  0x43   : > { %582 = vrot.lane.b32.xlu0 %v577_v11, %s1151_s9 }
  0x44   : > { %613 = vrot.lane.b32.xlu1 %v609_v12, %s1152_s14 }
  0x47   : > { %615 = vrot.lane.b32.xlu0 %v610_v13, %s1152_s14 }
  0xa9   : > { %v515_v32 = vpop.permute.xlu1 %514 }
  0xad   : > { %v548_v34 = vpop.permute.xlu1 %547 }
  0xb2   : > { %v581_v36 = vpop.permute.xlu1 %580 }
  0xb6   : > { %v298_v14 = vpop.permute.xlu0 %297  ;;  %v614_v38 = vpop.permute.xlu1 %613 }
  0xba   : > { %v517_v31 = vpop.permute.xlu0 %516 }
  0xbb   : > { %v519_v55 = vsel %vm518_vm4, %v515_v32, %v517_v31 }
  0xbe   : > { %v550_v33 = vpop.permute.xlu0 %549 }
  0xbf   : > { %v552_v56 = vsel %vm551_vm5, %v548_v34, %v550_v33 }
  0xc2   : > { %v583_v35 = vpop.permute.xlu0 %582 }
  0xc3   : > { %v585_v63 = vsel %vm584_vm6, %v581_v36, %v583_v35 }
  0xc6   : > { %v616_v37 = vpop.permute.xlu0 %615 }
  0xc7   : > { %v617_v1 = vsel %vm496_vm3, %v614_v38, %v616_v37 }
 0x112   : > { %v377_v15 = vpop.f32.mrb[0].mxu0 }
 0x113   : > { %v378_v16 = vadd.f32 %v377_v15, %v298_v14  ;;  %v379_v17 = vpop.f32.mrb[1].mxu0 }
 0x114   : > { %v380_v18 = vadd.f32 %v379_v17, %v298_v14 }
 0x115   : > { %v382_v19 = vmax.f32 %v378_v16, 0.0 }
 0x116   : > { %v383_v20 = vmax.f32 %v380_v18, 0.0 }
 0x117   : > { %492 = vrot.lane.b32.xlu0 %v382_v19, %s1152_s14 }
 0x118   : > { %494 = vrot.lane.b32.xlu1 %v383_v20, %s1152_s14  ;;  %405 = vmatprep.subr.mxu1 %v383_v20  ;;  %s1161_s14 = smov 96  }
 0x119   : > { %406 = vmatpush1.msra.mxu1 %v382_v19 }
 0x11a   : > { %963 = vmatmul.mubr.msk.f32.vlgmr.msra.gmra.mrb[0].mxu1 %vm398_vm2, %v384_v21  ;;  %v387_v21 = vld [vmem:[%s1446_s4 + $0x8] sm:$0xff] }
 0x11b   : > { %647 = vrot.lane.b32.xlu0 %v642_v22, %s1153_s13  ;;  %475 = vmatprep.mubr.f32.mxu1 %v1147_v0  ;;  %v386_v22 = vld [vmem:[%s1446_s4] sm:$0xff] }
 0x11c   : > { %645 = vrot.lane.b32.xlu1 %v641_v23, %s1153_s13  ;;  %s1164_s13 = smov 94  }
 0x11e   : > { %964 = vmatmul.mubr.msk.f32.gmra.mrb[2].mxu1 %vm398_vm2, %v385_v24 }
 0x11f   : > { %680 = vrot.lane.b32.xlu0 %v675_v25, %s1154_s19 }
 0x120   : > { %678 = vrot.lane.b32.xlu1 %v674_v26, %s1154_s19 }
 0x123   : > { %713 = vrot.lane.b32.xlu0 %v708_v27, %s1155_s20 }
 0x124   : > { %711 = vrot.lane.b32.xlu1 %v707_v28, %s1155_s20 }
 0x127   : > { %746 = vrot.lane.b32.xlu0 %v741_v29, %s1156_s21 }
 0x128   : > { %744 = vrot.lane.b32.xlu1 %v740_v30, %s1156_s21 }
 0x189   : > { %v493_v39 = vpop.permute.xlu0 %492 }
 0x18a   : > { %v1316_v40 = vsel %vm496_vm3, 0.0, %v493_v39  ;;  %v495_v41 = vpop.permute.xlu1 %494 }
 0x18b   : > { %v556_v42 = vmul.f32 %v548_v34, %v1316_v40  ;;  %v523_v43 = vmul.f32 %v515_v32, %v1316_v40  ;;  %v621_v45 = vmul.f32 %v614_v38, %v1316_v40  ;;  %v589_v46 = vmul.f32 %v581_v36, %v1316_v40 }
 0x18c   : > { %v502_v50 = vsel %vm496_vm3, %v495_v41, 0.0  ;;  %v1333_v54 = vsel %vm496_vm3, %v493_v39, %v495_v41  ;;  %v503_v39 = vld [vmem:[#allocation2] sm:$0xff]  ;;  %vm765_vm3 = vcmask 769024  }
 0x18d   : > { %562 = vrot.lane.b32.xlu0 %v556_v42, %s1157_s22  ;;  %529 = vrot.lane.b32.xlu1 %v523_v43, %s1158_s23  ;;  %v525_v53 = vmul.f32 %v517_v31, %v502_v50  ;;  %v648_v57 = vpop.permute.xlu0 %647  ;;  %v557_v58 = vmul.f32 %v552_v56, %v1333_v54  ;;  %v524_v59 = vmul.f32 %v519_v55, %v1333_v54 }
 0x18e   : > { %v646_v44 = vpop.permute.xlu1 %645  ;;  %v591_v60 = vmul.f32 %v583_v35, %v502_v50  ;;  %v558_v61 = vmul.f32 %v550_v33, %v502_v50  ;;  %v622_v2 = vmul.f32 %v617_v1, %v1333_v54  ;;  %v590_v3 = vmul.f32 %v585_v63, %v1333_v54 }
 0x18f   : > { %v654_v48 = vmul.f32 %v646_v44, %v1316_v40  ;;  %v656_v4 = vmul.f32 %v648_v57, %v502_v50  ;;  %v623_v6 = vmul.f32 %v616_v37, %v502_v50  ;;  %v650_v7 = vsel %vm649_vm7, %v646_v44, %v648_v57 }
 0x190   : > { %v655_v9 = vmul.f32 %v650_v7, %v1333_v54  ;;  %v505_v42 = vmul.f32 %v503_v39, %v1316_v40 }
 0x191   : > { %627 = vrot.lane.b32.xlu0 %v621_v45, %s1159_s29  ;;  %595 = vrot.lane.b32.xlu1 %v589_v46, %s1160_s8  ;;  %v681_v62 = vpop.permute.xlu0 %680  ;;  %v504_v46 = vld [vmem:[#allocation2 + $0x8] sm:$0xff] }
 0x192   : > { %v679_v47 = vpop.permute.xlu1 %678  ;;  %v689_v13 = vmul.f32 %v681_v62, %v502_v50 }
 0x193   : > { %v687_v49 = vmul.f32 %v679_v47, %v1316_v40  ;;  %v683_v8 = vsel %vm682_vm8, %v679_v47, %v681_v62 }
 0x194   : > { %v688_v10 = vmul.f32 %v683_v8, %v1333_v54 }
 0x195   : > { %693 = vrot.lane.b32.xlu0 %v687_v49, %s1161_s14  ;;  %660 = vrot.lane.b32.xlu1 %v654_v48, %s1162_s17  ;;  %v714_v5 = vpop.permute.xlu0 %713 }
 0x196   : > { %v712_v51 = vpop.permute.xlu1 %711  ;;  %v722_v14 = vmul.f32 %v714_v5, %v502_v50 }
 0x197   : > { %v720_v52 = vmul.f32 %v712_v51, %v1316_v40  ;;  %v716_v15 = vsel %vm715_vm9, %v712_v51, %v714_v5 }
 0x198   : > { %v721_v17 = vmul.f32 %v716_v15, %v1333_v54 }
 0x199   : > { %533 = vrot.lane.b32.xlu0 %v525_v53, %s1158_s23  ;;  %726 = vrot.lane.b32.xlu1 %v720_v52, %s1163_s16  ;;  %v747_v11 = vpop.permute.xlu0 %746  ;;  %v506_v52 = vmul.f32 %v504_v46, %v1333_v54 }
 0x19a   : > { %v745_v12 = vpop.permute.xlu1 %744  ;;  %v755_v19 = vmul.f32 %v747_v11, %v502_v50 }
 0x19b   : > { %v749_v16 = vsel %vm748_vm10, %v745_v12, %v747_v11  ;;  %v753_v20 = vmul.f32 %v745_v12, %v1316_v40 }
 0x19c   : > { %v754_v18 = vmul.f32 %v749_v16, %v1333_v54 }
 0x19d   : > { %564 = vrot.lane.b32.xlu0 %v557_v58, %s1157_s22  ;;  %531 = vrot.lane.b32.xlu1 %v524_v59, %s1158_s23 }
 0x1a1   : > { %599 = vrot.lane.b32.xlu0 %v591_v60, %s1160_s8  ;;  %566 = vrot.lane.b32.xlu1 %v558_v61, %s1157_s22 }
 0x1a5   : > { %629 = vrot.lane.b32.xlu0 %v622_v2, %s1159_s29  ;;  %597 = vrot.lane.b32.xlu1 %v590_v3, %s1160_s8  ;;  %s284_s8 = sand.u32 1, %s1134_s25  }
 0x1a6   : > { %s1400_s20 = scalar_lea.sflag [#allocation4], %s284_s8 }
 0x1a9   : > { %631 = vrot.lane.b32.xlu1 %v623_v6, %s1159_s29  ;;  %664 = vrot.lane.b32.xlu0 %v656_v4, %s1162_s17 }
 0x1ad   : > { %662 = vrot.lane.b32.xlu1 %v655_v9, %s1162_s17  ;;  %695 = vrot.lane.b32.xlu0 %v688_v10, %s1161_s14 }
 0x1b1   : > { %697 = vrot.lane.b32.xlu1 %v689_v13, %s1161_s14  ;;  %730 = vrot.lane.b32.xlu0 %v722_v14, %s1163_s16  ;;  %s957_s14 = sshll.u32 %s284_s8, 6 }
 0x1b2   : > { %s286_s17 = scalar_lea.vmem [#allocation5], %s957_s14 }
 0x1b5   : > { %728 = vrot.lane.b32.xlu1 %v721_v17, %s1163_s16  ;;  %761 = vrot.lane.b32.xlu0 %v754_v18, %s1164_s13  ;;  %s877_s16 = sshll.u32 %s286_s17, 4  ;;  %s1393_s16 = int_to_ptr.vmem [resolvable:$true] %s877_s16 }
 0x1b6   : > { %s1076_s21 = scalar_lea.vmem %s1393_s16, 1024 }
 0x1b7   : > { %p1077_p6 = scmp.ne.s32.totalorder %s1393_s16, %s1076_s21 }
 0x1b9   : > { %763 = vrot.lane.b32.xlu1 %v755_v19, %s1164_s13  ;;  %759 = vrot.lane.b32.xlu0 %v753_v20, %s1164_s13  ;;  %s973_s13 = sshll.u32 %s1228_s28, 10  ;;  %p1078_p10 = pnand %p1077_p6, %p1460_p9 }
 0x1ba   : > { %s1398_s19 = scalar_lea.hbm %s1449_s7, %s973_s13  ;;  %s1165_s28 = smov [#allocation5]  }
 0x1bb   : > { %p1079_p12 = pneg %p1078_p10  ;;  %s1080_s22 = sshll.u32 %s1165_s28, 4  ;;  %s1081_s22 = int_to_ptr.vmem [resolvable:$false] %s1080_s22 }
 0x1bc   : > { %s1082_s23 = scalar_lea.vmem %s1081_s22, 2048  ;;  %p1083_p2 = scmp.lt.s32.totalorder %s1393_s16, %s1081_s22 }
 0x1bd   : > { %395 = vperm.xlu0 %1045, %v387_v21   ;;  %390 = vperm.xlu1 %1046, %v386_v22   ;;  %p1084_p3 = scmp.lt.s32.totalorder %s1082_s23, %s1076_s21 }
 0x1bf   : > { %p1085_p4 = por %p1084_p3, %p1083_p2 }
 0x1c1   : > { %p1086_p7 = pnand %p1085_p4, %p1079_p12 }
 0x1ed   : > { %v1366_v23 = vpop.f32.mrb[0].mxu1 }
 0x1ee   : > { %v1368_v24 = vpop.f32.mrb[1].mxu1 }
 0x1f1   : > { %v1370_v25 = vpop.f32.mrb[2].mxu1 }
 0x1f2   : > { %v1372_v26 = vpop.f32.mrb[3].mxu1 }
 0x1ff   : > { %v530_v27 = vpop.permute.xlu1 %529  ;;  %v563_v28 = vpop.permute.xlu0 %562 }
 0x203   : > { %v596_v29 = vpop.permute.xlu1 %595  ;;  %v628_v30 = vpop.permute.xlu0 %627 }
 0x207   : > { %v661_v31 = vpop.permute.xlu1 %660  ;;  %v694_v32 = vpop.permute.xlu0 %693 }
 0x20b   : > { %v727_v33 = vpop.permute.xlu1 %726  ;;  %v534_v34 = vpop.permute.xlu0 %533 }
 0x20f   : > { %v532_v35 = vpop.permute.xlu1 %531  ;;  %v565_v36 = vpop.permute.xlu0 %564 }
 0x210   : > { %v536_v41 = vsel %vm535_vm11, %v530_v27, %v532_v35  ;;  %v537_v49 = vsel %vm535_vm11, %v532_v35, %v534_v34  ;;  %v569_v50 = vsel %vm568_vm12, %v563_v28, %v565_v36 }
 0x211   : > { %v540_v45 = vadd.f32 %v536_v41, %v505_v42  ;;  %v541_v56 = vadd.f32 %v537_v49, %v506_v52 }
 0x213   : > { %v567_v37 = vpop.permute.xlu1 %566  ;;  %v600_v38 = vpop.permute.xlu0 %599  ;;  %v573_v53 = vadd.f32 %v569_v50, %v540_v45 }
 0x214   : > { %v570_v55 = vsel %vm568_vm12, %v565_v36, %v567_v37 }
 0x215   : > { %v574_v60 = vadd.f32 %v570_v55, %v541_v56 }
 0x217   : > { %v598_v43 = vpop.permute.xlu1 %597  ;;  %v630_v44 = vpop.permute.xlu0 %629 }
 0x218   : > { %v602_v51 = vsel %vm601_vm13, %v596_v29, %v598_v43  ;;  %v603_v59 = vsel %vm601_vm13, %v598_v43, %v600_v38  ;;  %v634_v61 = vsel %vm633_vm14, %v628_v30, %v630_v44  ;;  %v774_v30 = vld [vmem:[%s1448_s6] sm:$0xff] }
 0x219   : > { %v606_v57 = vadd.f32 %v602_v51, %v573_v53  ;;  %v607_v1 = vadd.f32 %v603_v59, %v574_v60 }
 0x21b   : > { %v632_v47 = vpop.permute.xlu1 %631  ;;  %v665_v48 = vpop.permute.xlu0 %664  ;;  %v638_v2 = vadd.f32 %v634_v61, %v606_v57 }
 0x21c   : > { %v635_v62 = vsel %vm633_vm14, %v630_v44, %v632_v47 }
 0x21d   : > { %v639_v54 = vadd.f32 %v635_v62, %v607_v1 }
 0x21f   : > { %v663_v40 = vpop.permute.xlu1 %662  ;;  %v696_v58 = vpop.permute.xlu0 %695 }
 0x220   : > { %v667_v63 = vsel %vm666_vm15, %v661_v31, %v663_v40  ;;  %v668_v5 = vsel %vm666_vm15, %v663_v40, %v665_v48  ;;  %v700_v11 = vsel %vm699_vm0, %v694_v32, %v696_v58  ;;  %v775_v31 = vld [vmem:[%s1448_s6 + $0x8] sm:$0xff] }
 0x221   : > { %v671_v6 = vadd.f32 %v667_v63, %v638_v2  ;;  %v672_v8 = vadd.f32 %v668_v5, %v639_v54 }
 0x223   : > { %v698_v3 = vpop.permute.xlu1 %697  ;;  %v731_v4 = vpop.permute.xlu0 %730  ;;  %v704_v14 = vadd.f32 %v700_v11, %v671_v6 }
 0x224   : > { %v701_v7 = vsel %vm699_vm0, %v696_v58, %v698_v3 }
 0x225   : > { %v705_v15 = vadd.f32 %v701_v7, %v672_v8 }
 0x227   : > { %v729_v9 = vpop.permute.xlu1 %728  ;;  %v762_v10 = vpop.permute.xlu0 %761 }
 0x228   : > { %v733_v12 = vsel %vm732_vm1, %v727_v33, %v729_v9  ;;  %v734_v13 = vsel %vm732_vm1, %v729_v9, %v731_v4 }
 0x229   : > { %v737_v16 = vadd.f32 %v733_v12, %v704_v14  ;;  %v738_v17 = vadd.f32 %v734_v13, %v705_v15 }
 0x22b   : > { %v764_v18 = vpop.permute.xlu1 %763  ;;  %v760_v19 = vpop.permute.xlu0 %759 }
 0x22c   : > { %v767_v20 = vsel %vm765_vm3, %v762_v10, %v764_v18  ;;  %v766_v21 = vsel %vm765_vm3, %v760_v19, %v762_v10 }
 0x22d   : > { %v771_v22 = vadd.f32 %v767_v20, %v738_v17  ;;  %v770_v27 = vadd.f32 %v766_v21, %v737_v16 }
 0x22f   : > { %v773_v28 = vmax.f32 %v771_v22, 0.0  ;;  %v772_v29 = vmax.f32 %v770_v27, 0.0 }
 0x231   : > { %782 = vmatprep.subr.mxu0 %v773_v28 }
 0x232   : > { %783 = vmatpush1.msra.mxu0 %v772_v29 }
 0x233   : > { %965 = vmatmul.mubr.msk.f32.vlgmr.msra.gmra.mrb[2].mxu0 %vm398_vm2, %v774_v30 }
 0x234   : > { %852 = vmatprep.mubr.f32.mxu0 %v1147_v0 }
 0x237   : > { %966 = vmatmul.mubr.msk.f32.gmra.mrb[4].mxu0 %vm398_vm2, %v775_v31 }
 0x23c   : > { %v396_v32 = vpop.permute.xlu0 %395  ;;  %v391_v0 = vpop.permute.xlu1 %390 }
 0x23d   : > { %v478_v33 = vadd.f32 %v1370_v25, %v396_v32  ;;  %v480_v34 = vadd.f32 %v1372_v26, %v396_v32  ;;  %v472_v37 = vadd.f32 %v1366_v23, %v391_v0  ;;  %v474_v38 = vadd.f32 %v1368_v24, %v391_v0 }
 0x23f   : > { %v484_v35 = vmax.f32 %v478_v33, 0.0  ;;  %v485_v36 = vmax.f32 %v480_v34, 0.0  ;;  %v482_v39 = vmax.f32 %v472_v37, 0.0  ;;  %v483_v41 = vmax.f32 %v474_v38, 0.0 }
 0x241   : > { %488 = vst [vmem:[%s286_s17 + $0x10] sm:$0xff] %v484_v35  ;;  %489 = vst [vmem:[%s286_s17 + $0x18] sm:$0xff] %v485_v36 }
 0x242   : > { %486 = vst [vmem:[%s286_s17] sm:$0xff] %v482_v39  ;;  %487 = vst [vmem:[%s286_s17 + $0x8] sm:$0xff] %v483_v41 }
 0x306   : > { %v848_v25 = vpop.f32.mrb[2].mxu0 }
 0x307   : > { %859 = vst [vmem:[%s286_s17 + $0x20] sm:$0xff] %v848_v25  ;;  %v850_v26 = vpop.f32.mrb[3].mxu0 }
 0x308   : > { %860 = vst [vmem:[%s286_s17 + $0x28] sm:$0xff] %v850_v26 }
 0x30a   : > { %v854_v42 = vpop.f32.mrb[4].mxu0 }
 0x30b   : > { %861 = vst [vmem:[%s286_s17 + $0x30] sm:$0xff] %v854_v42  ;;  %v856_v23 = vpop.f32.mrb[5].mxu0 }
 0x30c   : > { %862 = vst [vmem:[%s286_s17 + $0x38] sm:$0xff] %v856_v23 }
 0x30d   : > { %1089 = shalt.err (!%p1086_p7)
}
 0x30e   : > { %s1090_s29 = scalar_lea.hbm %s1398_s19, 1024  ;;  %s1094_s17 = scalar_lea.hbm %s1449_s7, 2048 }
 0x30f   : > { %p1091_p8 = scmp.ne.s32.totalorder %s1398_s19, %s1090_s29  ;;  %p1095_p1 = scmp.lt.u32.totalorder %s1398_s19, %s1449_s7 }
 0x310   : > { %p1096_p0 = scmp.lt.u32.totalorder %s1094_s17, %s1090_s29  ;;  %p1098_p6 = scmp.lt.u32.totalorder %s1090_s29, %s1398_s19 }
 0x311   : > { %p1092_p11 = pnand %p1091_p8, %p1460_p9 }
 0x312   : > { %p1097_p5 = por %p1096_p0, %p1095_p1 }
 0x313   : > { %p1093_p13 = pneg %p1092_p11 }
 0x314   : > { %p1099_p10 = por %p1098_p6, %p1097_p5 }
 0x316   : > { %p1100_p12 = pnand %p1099_p10, %p1093_p13 }
 0x318   : > { %1103 = shalt.err (!%p1100_p12)
}
 0x319   : > { %s1166_s18 = smov 256  }
 0x31a   : > { %978 = dma.vmem_to_hbm [thread:$0]  (%p1460_p9), %s1393_s16, 1024, %s1398_s19, %s1400_s20, %s1166_s18, %s1166_s18, %s1151_s9  }
 0x31b PF: > { %p990_p2 = scmp.ge.s32.totalorder %s1142_s27, 2  ;;  %s892_s21 = sand.u32 1, %s1130_s24  }
 0x31c   : > { %p1461_p3 = scmp.ne.s32.totalorder %s1454_s12, 0  ;;  %s893_s28 = scalar_lea.sflag [#allocation4], %s892_s21 }
 0x31e   : > { %p985_p4 = pnand %p990_p2, %p1461_p3 }
 0x320   : > { %1125 = dma.done.wait (!%p985_p4), %s893_s28, 1024  }
 0x321   : > { %1127 = vsyncadd (!%p985_p4), %s893_s28, 4294966272  ;;  %p18_p7 = scmp.ge.s32.totalorder %s1232_s30, 4   ;;  %s1462_s24 = smov %s1134_s25 }
 0x322   : > { %s1463_s25 = smov %s1138_s26  ;;  %s1464_s26 = smov %s1243_s10 }
 0x323   : > { %s1465_s27 = smov %s1232_s30  ;;  %20 = sbr.rel (!%p18_p7) target bundleno = 4 (0x4), region = 96 }
 0x32a   :  { %898 = vsyncpa [#allocation3], 1 }
 0x32b   :  { %900 = vsyncpa [#allocation3 + $0x1], 1 }
 0x32c   :  { %901 = vsyncpa [#allocation4], 1 }
 0x32d   :  { %903 = vsyncpa [#allocation4 + $0x1], 1 }

</bundles_post_ra>
